<compile_context>
chip_gen: v5e
topology: v5e:2x2
jax: 0.10.0
libtpu: 0.0.40
codegen_flags: <defaults>
</compile_context>

<pallas_src>
import functools

import jax
import jax.numpy as jnp
from jax.experimental import pallas as pl
from jax.experimental.pallas import tpu as pltpu


def _round_up(n: int, m: int) -> int:
    return ((n + m - 1) // m) * m


def _sublane(dtype) -> int:
    # f32 -> 8, bf16/f16 -> 16, int8/fp8 -> 32 (sublane packing).
    return {4: 8, 2: 16, 1: 32}.get(jnp.dtype(dtype).itemsize, 8)


def _vmem_limit_bytes() -> int:
    """~75% of this chip's VMEM (96 MiB on v5e/v6e, 48 MiB on v7x), capped at 100 MiB."""
    try:
        cap = int(pltpu.get_tpu_info().vmem_capacity_bytes)
    except Exception:  # conservative fallback, safe on every generation
        cap = 64 * 1024 * 1024
    return min((cap * 3) // 4, 100 * 1024 * 1024)


def _mlp_fused_kernel(*refs, n_layers: int):
    """Fused forward for one batch tile.

    refs = (x_ref, w0, b0, w1, b1, ..., o_ref)
      x_ref : (TB, K0p)   padded activation tile
      w_i   : (Kip, Nip)  zero-padded weight (resident; constant index_map)
      b_i   : (1,  Nip)   zero-padded bias
      o_ref : (TB, NLp)   padded output tile

    Padding correctness: padded weight rows/cols and padded bias lanes are 0 and
    tanh(0) == 0, so padded feature lanes stay exactly 0 through every layer.  If the
    activation is ever swapped for one with f(0) != 0 (sigmoid, softplus, ...) the padded
    lanes would leak into real outputs via the next layer's matmul.
    """
    x_ref = refs[0]
    o_ref = refs[-1]
    h = x_ref[...]
    # Static unroll over layers (small L): activations never leave vregs/VMEM.
    for i in range(n_layers):
        w_ref = refs[1 + 2 * i]
        b_ref = refs[2 + 2 * i]
        # MXU sees operands in the parameter dtype (bf16-native on v6e/v7x), f32 accumulate.
        h = jnp.dot(h.astype(w_ref.dtype), w_ref[...],
                    preferred_element_type=jnp.float32)
        h = h + b_ref[...].astype(jnp.float32)          # (TB,Ni) + (1,Ni), f32 VPU
        if i < n_layers - 1:
            h = jnp.tanh(h)                             # EUP, f32 (no bf16 EUP on v5e)
    o_ref[...] = h.astype(o_ref.dtype)


def _pad_params(params):
    """Zero-pad every layer to lane-dense (multiple-of-128) feature dims, in its own dtype."""
    ws, bs = [], []
    for w, b in params:
        ki, ni = w.shape
        kp, np_ = _round_up(ki, 128), _round_up(ni, 128)
        w_pad = jnp.zeros((kp, np_), w.dtype).at[:ki, :ni].set(w)
        b_pad = jnp.zeros((1, np_), b.dtype).at[:, :ni].set(jnp.reshape(b, (1, ni)))
        ws.append(w_pad)
        bs.append(b_pad)
    return tuple(ws), tuple(bs)


def _batch_tiling(batch: int, sub: int):
    """Pick (TB, B_pad): >= 2 tiles for medium/large batches (v7x megacore), tile capped
    at 256-512 rows to fill the 256-row MXU and bound VMEM."""
    b8 = _round_up(max(batch, sub), sub)
    if b8 < 128:
        tb = b8                                        # tiny batch: one tile, no waste
    else:
        cap = 512 if b8 >= 4096 else 256
        tb = min(_round_up(-(-b8 // 2), sub), cap)     # at least 2 tiles
    return tb, _round_up(b8, tb)


def _mlp_forward_padded(x, ws, bs, *, d_out: int):
    B, K0 = x.shape
    L = len(ws)
    k0p = ws[0].shape[0]
    nlp = ws[-1].shape[1]

    tb, b_pad = _batch_tiling(B, _sublane(x.dtype))
    x_pad = jnp.zeros((b_pad, k0p), x.dtype).at[:B, :K0].set(x)

    # Activation/output are tiled over the batch; every weight/bias uses a constant
    # index_map so the pipeline fetches it once per core and it stays resident.
    in_specs = [pl.BlockSpec((tb, k0p), lambda i: (i, 0))]
    wb_args = []
    for w, b in zip(ws, bs):
        in_specs.append(pl.BlockSpec(w.shape, lambda i: (0, 0)))
        in_specs.append(pl.BlockSpec(b.shape, lambda i: (0, 0)))
        wb_args += [w, b]

    out_pad = pl.pallas_call(
        functools.partial(_mlp_fused_kernel, n_layers=L),
        out_shape=jax.ShapeDtypeStruct((b_pad, nlp), x.dtype),
        grid=(b_pad // tb,),
        in_specs=in_specs,
        out_specs=pl.BlockSpec((tb, nlp), lambda i: (i, 0)),
        compiler_params=pltpu.CompilerParams(
            dimension_semantics=("parallel",),   # shard batch tiles across TCs (v7x)
            vmem_limit_bytes=_vmem_limit_bytes(),
        ),
    )(x_pad, *wb_args)

    return out_pad[:B, :d_out]


def make_mlp_forward(params):
    """Pad/stage the parameters once and return a jitted forward(x) closure."""
    ws, bs = _pad_params(params)
    d_out = params[-1][0].shape[1]
    fwd = jax.jit(functools.partial(_mlp_forward_padded, d_out=d_out))

    def forward(x):
        return fwd(x, ws, bs)

    return forward


def mlp_forward(params, x):
    """One-shot convenience wrapper (re-pads params per call; prefer make_mlp_forward)."""
    return make_mlp_forward(params)(x)


def init_mlp_params(key, sizes, dtype=jnp.float32):
    """Deterministic init mimicking torch.nn.Linear default:
    U(-1/sqrt(fan_in), 1/sqrt(fan_in)) for both weight and bias."""
    params = []
    for i in range(len(sizes) - 1):
        fan_in, fan_out = sizes[i], sizes[i + 1]
        key, kw, kb = jax.random.split(key, 3)
        bound = 1.0 / (fan_in ** 0.5)
        w = jax.random.uniform(kw, (fan_in, fan_out), dtype, -bound, bound)
        b = jax.random.uniform(kb, (1, fan_out), dtype, -bound, bound)
        params.append((w, b))
    return params


if __name__ == "__main__":
    # sizes consistent with the module constructor, e.g. MLP([16, 32, 32, 8])
    sizes = [16, 32, 32, 8]
    batch = 4

    key = jax.random.PRNGKey(0)
    key, kx = jax.random.split(key)
    x = jax.random.normal(kx, (batch, sizes[0]), dtype=jnp.float32)

    params = init_mlp_params(key, sizes)

    forward = make_mlp_forward(params)   # params padded/staged once, forward is jitted
    out = forward(x)
    jax.block_until_ready(out)

    # Pure-JAX reference check of the exact same semantics.
    ref = x
    for i, (w, b) in enumerate(params):
        ref = ref @ w + b
        if i < len(params) - 1:
            ref = jnp.tanh(ref)
    assert out.shape == (batch, sizes[-1])
    assert jnp.allclose(out, ref, atol=1e-5, rtol=1e-5)

    print("KERNEL_OK")
</pallas_src>

<mosaic_0001>
module attributes {stable_mosaic.version = 11 : i64} {
  func.func @_mlp_fused_kernel(%arg0: i32, %arg1: memref<8x128xf32, #tpu.memory_space<vmem>>, %arg2: memref<128x128xf32, #tpu.memory_space<vmem>>, %arg3: memref<1x128xf32, #tpu.memory_space<vmem>>, %arg4: memref<128x128xf32, #tpu.memory_space<vmem>>, %arg5: memref<1x128xf32, #tpu.memory_space<vmem>>, %arg6: memref<128x128xf32, #tpu.memory_space<vmem>>, %arg7: memref<1x128xf32, #tpu.memory_space<vmem>>, %arg8: memref<8x128xf32, #tpu.memory_space<vmem>>) attributes {dimension_semantics = [#tpu.dimension_semantics<parallel>], iteration_bounds = array<i64: 1>, scalar_prefetch = 0 : i64, scratch_operands = 0 : i64, tpu.core_type = #tpu.core_type<tc>, window_params = [{transform_indices = @transform_0, window_bounds = array<i64: 8, 128>}, {pipeline_mode = #tpu.pipeline_mode<synchronous>, transform_indices = @transform_1, window_bounds = array<i64: 128, 128>}, {pipeline_mode = #tpu.pipeline_mode<synchronous>, transform_indices = @transform_2, window_bounds = array<i64: 1, 128>}, {pipeline_mode = #tpu.pipeline_mode<synchronous>, transform_indices = @transform_3, window_bounds = array<i64: 128, 128>}, {pipeline_mode = #tpu.pipeline_mode<synchronous>, transform_indices = @transform_4, window_bounds = array<i64: 1, 128>}, {pipeline_mode = #tpu.pipeline_mode<synchronous>, transform_indices = @transform_5, window_bounds = array<i64: 128, 128>}, {pipeline_mode = #tpu.pipeline_mode<synchronous>, transform_indices = @transform_6, window_bounds = array<i64: 1, 128>}, {transform_indices = @transform_7, window_bounds = array<i64: 8, 128>}]} {
    %c0 = arith.constant 0 : index
    %c0_0 = arith.constant 0 : index
    %0 = vector.load %arg1[%c0, %c0_0] : memref<8x128xf32, #tpu.memory_space<vmem>>, vector<8x128xf32>
    %c0_1 = arith.constant 0 : index
    %c0_2 = arith.constant 0 : index
    %1 = vector.load %arg2[%c0_1, %c0_2] : memref<128x128xf32, #tpu.memory_space<vmem>>, vector<128x128xf32>
    %cst = arith.constant dense<0.000000e+00> : vector<8x128xf32>
    %2 = tpu.matmul %0, %1, %cst {dimension_numbers = #tpu.dot_dimension_numbers<[1], [0], [0], [1], [0, 0, 1, 1], [], []>} : vector<8x128xf32>, vector<128x128xf32>, vector<8x128xf32> -> vector<8x128xf32>
    %c0_3 = arith.constant 0 : index
    %c0_4 = arith.constant 0 : index
    %3 = vector.load %arg3[%c0_3, %c0_4] : memref<1x128xf32, #tpu.memory_space<vmem>>, vector<1x128xf32>
    %4 = vector.broadcast %3 : vector<1x128xf32> to vector<8x128xf32>
    %5 = arith.addf %2, %4 : vector<8x128xf32>
    %6 = math.tanh %5 : vector<8x128xf32>
    %c0_5 = arith.constant 0 : index
    %c0_6 = arith.constant 0 : index
    %7 = vector.load %arg4[%c0_5, %c0_6] : memref<128x128xf32, #tpu.memory_space<vmem>>, vector<128x128xf32>
    %cst_7 = arith.constant dense<0.000000e+00> : vector<8x128xf32>
    %8 = tpu.matmul %6, %7, %cst_7 {dimension_numbers = #tpu.dot_dimension_numbers<[1], [0], [0], [1], [0, 0, 1, 1], [], []>} : vector<8x128xf32>, vector<128x128xf32>, vector<8x128xf32> -> vector<8x128xf32>
    %c0_8 = arith.constant 0 : index
    %c0_9 = arith.constant 0 : index
    %9 = vector.load %arg5[%c0_8, %c0_9] : memref<1x128xf32, #tpu.memory_space<vmem>>, vector<1x128xf32>
    %10 = vector.broadcast %9 : vector<1x128xf32> to vector<8x128xf32>
    %11 = arith.addf %8, %10 : vector<8x128xf32>
    %12 = math.tanh %11 : vector<8x128xf32>
    %c0_10 = arith.constant 0 : index
    %c0_11 = arith.constant 0 : index
    %13 = vector.load %arg6[%c0_10, %c0_11] : memref<128x128xf32, #tpu.memory_space<vmem>>, vector<128x128xf32>
    %cst_12 = arith.constant dense<0.000000e+00> : vector<8x128xf32>
    %14 = tpu.matmul %12, %13, %cst_12 {dimension_numbers = #tpu.dot_dimension_numbers<[1], [0], [0], [1], [0, 0, 1, 1], [], []>} : vector<8x128xf32>, vector<128x128xf32>, vector<8x128xf32> -> vector<8x128xf32>
    %c0_13 = arith.constant 0 : index
    %c0_14 = arith.constant 0 : index
    %15 = vector.load %arg7[%c0_13, %c0_14] : memref<1x128xf32, #tpu.memory_space<vmem>>, vector<1x128xf32>
    %16 = vector.broadcast %15 : vector<1x128xf32> to vector<8x128xf32>
    %17 = arith.addf %14, %16 : vector<8x128xf32>
    %c0_15 = arith.constant 0 : index
    %c0_16 = arith.constant 0 : index
    %18 = vector.load %arg8[%c0_15, %c0_16] : memref<8x128xf32, #tpu.memory_space<vmem>>, vector<8x128xf32>
    tpu.vector_store %arg8[%c0_15, %c0_16], %17 {strides = array<i32>} : memref<8x128xf32, #tpu.memory_space<vmem>>, vector<8x128xf32>,
    return
  }
  func.func @transform_0(%arg0: i32) -> (i32, i32) {
    %c0_i32 = arith.constant 0 : i32
    %c0_i32_0 = arith.constant 0 : i32
    return %arg0, %c0_i32 : i32, i32
  }
  func.func @transform_1(%arg0: i32) -> (i32, i32) {
    %c0_i32 = arith.constant 0 : i32
    %c0_i32_0 = arith.constant 0 : i32
    %c0_i32_1 = arith.constant 0 : i32
    return %c0_i32, %c0_i32_0 : i32, i32
  }
  func.func @transform_2(%arg0: i32) -> (i32, i32) {
    %c0_i32 = arith.constant 0 : i32
    %c0_i32_0 = arith.constant 0 : i32
    %c0_i32_1 = arith.constant 0 : i32
    return %c0_i32, %c0_i32_0 : i32, i32
  }
  func.func @transform_3(%arg0: i32) -> (i32, i32) {
    %c0_i32 = arith.constant 0 : i32
    %c0_i32_0 = arith.constant 0 : i32
    %c0_i32_1 = arith.constant 0 : i32
    return %c0_i32, %c0_i32_0 : i32, i32
  }
  func.func @transform_4(%arg0: i32) -> (i32, i32) {
    %c0_i32 = arith.constant 0 : i32
    %c0_i32_0 = arith.constant 0 : i32
    %c0_i32_1 = arith.constant 0 : i32
    return %c0_i32, %c0_i32_0 : i32, i32
  }
  func.func @transform_5(%arg0: i32) -> (i32, i32) {
    %c0_i32 = arith.constant 0 : i32
    %c0_i32_0 = arith.constant 0 : i32
    %c0_i32_1 = arith.constant 0 : i32
    return %c0_i32, %c0_i32_0 : i32, i32
  }
  func.func @transform_6(%arg0: i32) -> (i32, i32) {
    %c0_i32 = arith.constant 0 : i32
    %c0_i32_0 = arith.constant 0 : i32
    %c0_i32_1 = arith.constant 0 : i32
    return %c0_i32, %c0_i32_0 : i32, i32
  }
  func.func @transform_7(%arg0: i32) -> (i32, i32) {
    %c0_i32 = arith.constant 0 : i32
    %c0_i32_0 = arith.constant 0 : i32
    return %arg0, %c0_i32 : i32, i32
  }
}

</mosaic_0001>

<bundles_post_ra>
// kernel: _mlp_forward_padded.1
= control target key start
LH: loop header
LB: loop body
LE: loop exit
PB: predicated region body
PF: predicated region fallthrough
CT: control target
= control target key end

     0   :  { %12 = vsyncpa [#allocation3], 0  ;;  %s360_s0 = inlined_call_operand.vmem [shape: f32[8,128], index: 0, kind: input, shape index: {}]   ;;  %s361_s1 = inlined_call_operand.hbm [shape: f32[128,128], index: 1, kind: input, shape index: {}]   ;;  %s362_s2 = inlined_call_operand.vmem [shape: f32[1,128], index: 2, kind: input, shape index: {}]   ;;  %s363_s3 = inlined_call_operand.hbm [shape: f32[128,128], index: 3, kind: input, shape index: {}]   ;;  %s364_s4 = inlined_call_operand.vmem [shape: f32[1,128], index: 4, kind: input, shape index: {}]   ;;  %s365_s5 = inlined_call_operand.hbm [shape: f32[128,128], index: 5, kind: input, shape index: {}]   ;;  %s366_s6 = inlined_call_operand.vmem [shape: f32[1,128], index: 6, kind: input, shape index: {}]   ;;  %s367_s7 = inlined_call_operand.vmem [shape: f32[8,128], index: 7, kind: output, shape index: {}]  }
   0x1   :  { %13 = vsyncpa [#allocation5], 0  ;;  %s35_s26 = sshll.u32 %s363_s3, 4  ;;  %s291_s27 = smov [#allocation4]   ;;  %s36_s26 = int_to_ptr.hbm [resolvable:$true] %s35_s26 }
   0x2   :  { %s37_s28 = sshll.u32 %s291_s27, 4  ;;  %s20_s8 = sshll.u32 %s361_s1, 4  ;;  %s38_s28 = int_to_ptr.vmem [resolvable:$true] %s37_s28  ;;  %s21_s8 = int_to_ptr.hbm [resolvable:$true] %s20_s8 }
   0x3   :  { %s292_s9 = smov 128   ;;  %s293_s10 = smov 8  }
   0x4   :  { %43 = dma.hbm_to_vmem [thread:$0]  %s36_s26, 2048, %s38_s28, [#allocation5], %s292_s9, %s292_s9, %s293_s10  }
   0x5   :  { %s294_s11 = smov [#allocation2]   ;;  %s50_s15 = sshll.u32 %s365_s5, 4  ;;  %s51_s15 = int_to_ptr.hbm [resolvable:$true] %s50_s15 }
   0x6   :  { %s22_s12 = sshll.u32 %s294_s11, 4  ;;  %s295_s3 = smov [#allocation6]   ;;  %s23_s12 = int_to_ptr.vmem [resolvable:$true] %s22_s12 }
   0x7   :  { %28 = dma.hbm_to_vmem [thread:$0]  %s21_s8, 2048, %s23_s12, [#allocation3], %s292_s9, %s292_s9, %s293_s10  }
   0x8   :  { %s52_s16 = sshll.u32 %s295_s3, 4  ;;  %s53_s16 = int_to_ptr.vmem [resolvable:$true] %s52_s16 }
   0x9   :  { %58 = dma.hbm_to_vmem [thread:$0]  %s51_s15, 2048, %s53_s16, [#allocation5], %s292_s9, %s292_s9, %s293_s10  }
   0xa   :  { %287 = dma.done.wait [#allocation3], 2048  }
   0xb   :  { %288 = vsyncadd [#allocation3], 4294965248 }
   0xc   :  { %289 = dma.done.wait [#allocation5], 4096  }
   0xd   :  { %290 = vsyncadd [#allocation5], 4294963200  ;;  %v89_v0 = vld [vmem:[#allocation2 + $0x78] sm:$0xff]  ;;  %v88_v1 = vld [vmem:[#allocation2 + $0x70] sm:$0xff] }
   0xe   :  { %94 = vmatpush.msra.mxu0 %v89_v0  ;;  %v87_v2 = vld [vmem:[#allocation2 + $0x68] sm:$0xff]  ;;  %v86_v3 = vld [vmem:[#allocation2 + $0x60] sm:$0xff]  ;;  %v130_v4 = vld [vmem:[#allocation4 + $0x78] sm:$0xff] }
   0xf   :  { %v85_v5 = vld [vmem:[#allocation2 + $0x58] sm:$0xff]  ;;  %135 = vmatpush.msra.mxu1 %v130_v4  ;;  %v129_v6 = vld [vmem:[#allocation4 + $0x70] sm:$0xff]  ;;  %v128_v7 = vld [vmem:[#allocation4 + $0x68] sm:$0xff] }
  0x10   :  { %95 = vmatpush.msra.mxu0 %v88_v1  ;;  %v84_v8 = vld [vmem:[#allocation2 + $0x50] sm:$0xff]  ;;  %v127_v9 = vld [vmem:[#allocation4 + $0x60] sm:$0xff]  ;;  %v83_v10 = vld [vmem:[#allocation2 + $0x48] sm:$0xff] }
  0x11   :  { %136 = vmatpush.msra.mxu1 %v129_v6  ;;  %v126_v11 = vld [vmem:[#allocation4 + $0x58] sm:$0xff]  ;;  %v82_v12 = vld [vmem:[#allocation2 + $0x40] sm:$0xff]  ;;  %v125_v13 = vld [vmem:[#allocation4 + $0x50] sm:$0xff] }
  0x12   :  { %96 = vmatpush.msra.mxu0 %v87_v2  ;;  %v81_v14 = vld [vmem:[#allocation2 + $0x38] sm:$0xff]  ;;  %v124_v15 = vld [vmem:[#allocation4 + $0x48] sm:$0xff]  ;;  %v80_v16 = vld [vmem:[#allocation2 + $0x30] sm:$0xff] }
  0x13   :  { %137 = vmatpush.msra.mxu1 %v128_v7  ;;  %v123_v17 = vld [vmem:[#allocation4 + $0x40] sm:$0xff]  ;;  %v79_v18 = vld [vmem:[#allocation2 + $0x28] sm:$0xff]  ;;  %v122_v19 = vld [vmem:[#allocation4 + $0x38] sm:$0xff] }
  0x14   :  { %97 = vmatpush.msra.mxu0 %v86_v3  ;;  %v78_v20 = vld [vmem:[#allocation2 + $0x20] sm:$0xff]  ;;  %v121_v21 = vld [vmem:[#allocation4 + $0x30] sm:$0xff]  ;;  %v77_v22 = vld [vmem:[#allocation2 + $0x18] sm:$0xff] }
  0x15   :  { %138 = vmatpush.msra.mxu1 %v127_v9  ;;  %v120_v23 = vld [vmem:[#allocation4 + $0x28] sm:$0xff]  ;;  %v76_v24 = vld [vmem:[#allocation2 + $0x10] sm:$0xff]  ;;  %v74_v26 = vld [vmem:[#allocation2] sm:$0xff] }
  0x16   :  { %98 = vmatpush.msra.mxu0 %v85_v5  ;;  %v75_v25 = vld [vmem:[#allocation2 + $0x8] sm:$0xff]  ;;  %v73_v27 = vld [vmem:[%s360_s0] sm:$0xff]  ;;  %v118_v29 = vld [vmem:[#allocation4 + $0x18] sm:$0xff] }
  0x17   :  { %139 = vmatpush.msra.mxu1 %v126_v11  ;;  %v119_v28 = vld [vmem:[#allocation4 + $0x20] sm:$0xff]  ;;  %v117_v30 = vld [vmem:[#allocation4 + $0x10] sm:$0xff]  ;;  %v116_v31 = vld [vmem:[#allocation4 + $0x8] sm:$0xff] }
  0x18   :  { %99 = vmatpush.msra.mxu0 %v84_v8  ;;  %v115_v32 = vld [vmem:[#allocation4] sm:$0xff]  ;;  %v171_v33 = vld [vmem:[#allocation6 + $0x78] sm:$0xff]  ;;  %v170_v34 = vld [vmem:[#allocation6 + $0x70] sm:$0xff] }
  0x19   :  { %140 = vmatpush.msra.mxu1 %v125_v13  ;;  %176 = vmatpush.msra.mxu2 %v171_v33  ;;  %v169_v35 = vld [vmem:[#allocation6 + $0x68] sm:$0xff]  ;;  %v168_v36 = vld [vmem:[#allocation6 + $0x60] sm:$0xff]  ;;  %v167_v37 = vld [vmem:[#allocation6 + $0x58] sm:$0xff] }
  0x1a   :  { %100 = vmatpush.msra.mxu0 %v83_v10  ;;  %v166_v38 = vld [vmem:[#allocation6 + $0x50] sm:$0xff]  ;;  %v165_v39 = vld [vmem:[#allocation6 + $0x48] sm:$0xff]  ;;  %v164_v40 = vld [vmem:[#allocation6 + $0x40] sm:$0xff] }
  0x1b   :  { %141 = vmatpush.msra.mxu1 %v124_v15  ;;  %177 = vmatpush.msra.mxu2 %v170_v34  ;;  %v163_v41 = vld [vmem:[#allocation6 + $0x38] sm:$0xff]  ;;  %v162_v42 = vld [vmem:[#allocation6 + $0x30] sm:$0xff]  ;;  %v161_v43 = vld [vmem:[#allocation6 + $0x28] sm:$0xff] }
  0x1c   :  { %101 = vmatpush.msra.mxu0 %v82_v12  ;;  %v208_v44 = vld [vmem:[%s362_s2] ss:$0 sm:$0xff]  ;;  %v159_v49 = vld [vmem:[#allocation6 + $0x18] sm:$0xff]  ;;  %v158_v50 = vld [vmem:[#allocation6 + $0x10] sm:$0xff] }
  0x1d   :  { %142 = vmatpush.msra.mxu1 %v123_v17  ;;  %178 = vmatpush.msra.mxu2 %v169_v35  ;;  %v160_v48 = vld [vmem:[#allocation6 + $0x20] sm:$0xff]  ;;  %v157_v51 = vld [vmem:[#allocation6 + $0x8] sm:$0xff] }
  0x1e   :  { %102 = vmatpush.msra.mxu0 %v81_v14  ;;  %v156_v52 = vld [vmem:[#allocation6] sm:$0xff] }
  0x1f   :  { %143 = vmatpush.msra.mxu1 %v122_v19  ;;  %179 = vmatpush.msra.mxu2 %v168_v36  ;;  %v209_v53 = vld [vmem:[%s364_s4] ss:$0 sm:$0xff] }
  0x20   :  { %103 = vmatpush.msra.mxu0 %v80_v16  ;;  %v210_v57 = vld [vmem:[%s366_s6] ss:$0 sm:$0xff] }
  0x21   :  { %144 = vmatpush.msra.mxu1 %v121_v21  ;;  %180 = vmatpush.msra.mxu2 %v167_v37 }
  0x22   :  { %104 = vmatpush.msra.mxu0 %v79_v18 }
  0x23   :  { %145 = vmatpush.msra.mxu1 %v120_v23  ;;  %181 = vmatpush.msra.mxu2 %v166_v38 }
  0x24   :  { %105 = vmatpush.msra.mxu0 %v78_v20 }
  0x25   :  { %146 = vmatpush.msra.mxu1 %v119_v28  ;;  %182 = vmatpush.msra.mxu2 %v165_v39 }
  0x26   :  { %106 = vmatpush.msra.mxu0 %v77_v22 }
  0x27   :  { %147 = vmatpush.msra.mxu1 %v118_v29  ;;  %183 = vmatpush.msra.mxu2 %v164_v40 }
  0x28   :  { %107 = vmatpush.msra.mxu0 %v76_v24 }
  0x29   :  { %148 = vmatpush.msra.mxu1 %v117_v30  ;;  %184 = vmatpush.msra.mxu2 %v163_v41 }
  0x2a   :  { %108 = vmatpush.msra.mxu0 %v75_v25 }
  0x2b   :  { %149 = vmatpush.msra.mxu1 %v116_v31  ;;  %185 = vmatpush.msra.mxu2 %v162_v42 }
  0x2c   :  { %109 = vmatpush.msra.mxu0 %v74_v26 }
  0x2d   :  { %110 = vmatmul.f32.vlgmr.msra.gmra.mxu0 %v73_v27  ;;  %150 = vmatpush.msra.mxu1 %v115_v32 }
  0x2e   :  { %186 = vmatpush.msra.mxu2 %v161_v43 }
  0x30   :  { %187 = vmatpush.msra.mxu2 %v160_v48 }
  0x32   :  { %188 = vmatpush.msra.mxu2 %v159_v49 }
  0x34   :  { %189 = vmatpush.msra.mxu2 %v158_v50 }
  0x36   :  { %190 = vmatpush.msra.mxu2 %v157_v51 }
  0x38   :  { %191 = vmatpush.msra.mxu2 %v156_v52 }
  0xaa   :  { %v111_v45 = vpop.f32.mrf.mxu0 }
  0xab   :  { %v112_v46 = vadd.f32 %v208_v44, %v111_v45 }
  0xad   :  { %211 = vtanh.f32 %v112_v46 }
  0xb3   :  { %v212_v47 = vpop.eup %211 }
  0xb4   :  { %151 = vmatmul.f32.vlgmr.msra.gmra.mxu1 %v212_v47 }
 0x131   :  { %v152_v54 = vpop.f32.mrf.mxu1 }
 0x132   :  { %v153_v55 = vadd.f32 %v209_v53, %v152_v54 }
 0x134   :  { %213 = vtanh.f32 %v153_v55 }
 0x13a   :  { %v214_v56 = vpop.eup %213 }
 0x13b   :  { %192 = vmatmul.f32.vlgmr.msra.gmra.mxu2 %v214_v56 }
 0x1be   :  { %v193_v58 = vpop.f32.mrf.mxu2 }
 0x1bf   :  { %v194_v59 = vadd.f32 %v210_v57, %v193_v58 }
 0x1c1   :  { %196 = vst [vmem:[%s367_s7] sm:$0xff] %v194_v59 }
 0x1c2   :  { %201 = vsyncpa [#allocation3], 1 }
 0x1c3   :  { %202 = vsyncpa [#allocation5], 1 }

</bundles_post_ra>
